<compile_context>
chip_gen: v7x
topology: tpu7x:2x2x1
jax: 0.10.0
libtpu: 0.0.40
codegen_flags: <defaults>
</compile_context>

<pallas_src>
import functools

import jax
import jax.numpy as jnp
from jax.experimental import pallas as pl
from jax.experimental.pallas import tpu as pltpu


_LANE = 128          # vreg lane width
_SUBLANE_F32 = 8     # f32 sublane packing


def _round_up(x, m):
    return ((x + m - 1) // m) * m


def _tpu_hw_info():
    """Best-effort (vmem_capacity_bytes, num_tensorcores) for this chip.

    Falls back to conservative values (64 MiB, 1 core) if the query fails or
    fields are missing, which is always safe (smaller tiles, no forced split).
    """
    vmem_bytes = 64 << 20
    num_tc = 1
    try:
        info = pltpu.get_tpu_info()
        vmem_bytes = int(getattr(info, "vmem_capacity_bytes", vmem_bytes))
        for attr in ("num_cores", "tensor_cores_per_chip", "num_tensorcores"):
            v = getattr(info, attr, None)
            if isinstance(v, int) and v > 0:
                num_tc = v
                break
    except Exception:
        pass
    return vmem_bytes, num_tc


def prepare_params(params, action_dim):
    """One-time parameter prep (hoisted out of the forward step).

    * Slices the final layer to the mu head (forward() never uses log_std).
    * Casts weights to bf16 (half the resident bytes + bf16 MXU path) and
      biases to f32 rows.
    Call this once and reuse the result across forward calls so the cast/slice
    HBM traffic is not paid per step.
    """
    num_linear = len(params)
    prepared = []
    for i, (w, b) in enumerate(params):
        w = jnp.asarray(w)
        b = jnp.asarray(b).reshape(1, -1)
        if i == num_linear - 1:
            w = w[:, :action_dim]
            b = b[:, :action_dim]
        prepared.append((w.astype(jnp.bfloat16), b.astype(jnp.float32)))
    return prepared


def _mlp_kernel(num_linear, *refs):
    """refs = (s_ref, W1, b1, ..., Wn, bn, mu_ref).

    Weights are bf16 (in, out) (math-identical to PyTorch x @ W.T), biases are
    f32 rows (1, out).  Matmuls run bf16 x bf16 -> f32 on the MXU; the bias
    add / ReLU / tanh stay in f32, and the inter-layer value is carried in
    bf16 to halve its VMEM footprint.
    """
    s_ref = refs[0]
    mu_ref = refs[-1]
    param_refs = refs[1:-1]

    x = s_ref[...].astype(jnp.bfloat16)
    for layer in range(num_linear):
        w = param_refs[2 * layer][...]        # bf16 (in, out)
        b = param_refs[2 * layer + 1][...]    # f32  (1, out)
        y = jnp.dot(x, w, preferred_element_type=jnp.float32) + b
        if layer < num_linear - 1:
            # ReLU in f32, keep the live inter-layer value bf16 (same numerics
            # as casting at the next matmul operand).
            x = jnp.maximum(y, 0.0).astype(jnp.bfloat16)
        else:
            # final_activation='tanh'; block is exactly the mu head.
            mu_ref[...] = jnp.tanh(y).astype(mu_ref.dtype)


def _choose_tile(B, state_dim, hidden_dims, action_dim, resident_bytes,
                 vmem_bytes, num_tc, tile_cap):
    """Pick the batch tile from a per-generation VMEM budget."""
    widest = max(hidden_dims + [action_dim])
    # Per-row working bytes: double-buffered s block + mu block, plus the
    # widest f32 accumulator and bf16 inter-layer activation.
    per_row = 2 * 4 * state_dim + 2 * 4 * action_dim + (4 + 2) * widest
    budget = int(0.5 * vmem_bytes) - resident_bytes
    tile = tile_cap
    if budget > 0:
        tile = min(tile, budget // max(per_row, 1))
    if num_tc > 1:
        # >=2 grid steps per core so block double-buffering hides DMA while
        # both cores get work; on single-core chips use the full tile.
        tile = min(tile, _round_up(pl.cdiv(B, 2 * num_tc), _SUBLANE_F32))
    tile = min(tile, _round_up(B, _SUBLANE_F32))
    tile = max(_SUBLANE_F32, (tile // _SUBLANE_F32) * _SUBLANE_F32)
    return tile


def gauss_policy_mlp_forward(s, prepared_params, action_dim, *, tile_b=1024):
    """Forward pass returning mu of shape (B, action_dim), dtype of `s`.

    prepared_params: output of prepare_params() (bf16 weights, f32 biases,
    final layer already sliced to the mu head).
    """
    B, state_dim = s.shape
    num_linear = len(prepared_params)

    vmem_bytes, num_tc = _tpu_hw_info()

    # --- weight buffering (budget-aware) --------------------------------------
    # Constant-index weight blocks never re-DMA; double-buffering them only
    # doubles residency.  Single-buffer once they take a real VMEM fraction.
    param_bytes = sum(w.size * w.dtype.itemsize + b.size * b.dtype.itemsize
                      for (w, b) in prepared_params)
    single_buffer_weights = param_bytes > int(0.12 * vmem_bytes)
    resident_bytes = param_bytes * (1 if single_buffer_weights else 2)

    # --- batch tiling (no wrapper-side padding) --------------------------------
    hidden_dims = [w.shape[1] for (w, _) in prepared_params[:-1]]
    tile = _choose_tile(B, state_dim, hidden_dims, action_dim, resident_bytes,
                        vmem_bytes, num_tc, tile_b)
    grid_b = pl.cdiv(B, tile)
    # Ragged last block: OOB rows compute garbage, OOB writes are dropped, and
    # nothing downstream reads past row B.

    in_specs = [pl.BlockSpec((tile, state_dim), lambda i: (i, 0))]
    flat_params = []
    for w, b in prepared_params:
        flat_params += [w, b]
        if single_buffer_weights:
            in_specs.append(pl.BlockSpec(w.shape, lambda i: (0, 0),
                                         pipeline_mode=pl.Buffered(1)))
            in_specs.append(pl.BlockSpec(b.shape, lambda i: (0, 0),
                                         pipeline_mode=pl.Buffered(1)))
        else:
            in_specs.append(pl.BlockSpec(w.shape, lambda i: (0, 0)))
            in_specs.append(pl.BlockSpec(b.shape, lambda i: (0, 0)))

    # Unpadded mu output block (last dim equals the full array last dim, which
    # is legal); HBM writeback is exactly B*action_dim*4 bytes.
    out_specs = pl.BlockSpec((tile, action_dim), lambda i: (i, 0))

    # --- per-generation VMEM limit ---------------------------------------------
    stream_bytes = 2 * tile * (state_dim + action_dim) * s.dtype.itemsize
    est = resident_bytes + stream_bytes + (2 << 20)
    vmem_limit = int(min(0.85 * vmem_bytes, max(32 << 20, 2 * est)))

    kernel = functools.partial(_mlp_kernel, num_linear)

    return pl.pallas_call(
        kernel,
        out_shape=jax.ShapeDtypeStruct((B, action_dim), s.dtype),
        grid=(grid_b,),
        in_specs=in_specs,
        out_specs=out_specs,
        compiler_params=pltpu.CompilerParams(
            dimension_semantics=("parallel",),
            vmem_limit_bytes=vmem_limit),
    )(s, *flat_params)


def init_params(key, state_dim, hidden_width, depth, action_dim):
    """Deterministic synthetic parameters (not a checkpoint load)."""
    dims = [state_dim] + [hidden_width] * depth + [2 * action_dim]
    params = []
    for i in range(len(dims) - 1):
        key, kw, kb = jax.random.split(key, 3)
        fan_in = dims[i]
        scale = 1.0 / jnp.sqrt(jnp.float32(fan_in))
        w = jax.random.uniform(
            kw, (dims[i], dims[i + 1]), jnp.float32, -scale, scale)
        b = jax.random.uniform(
            kb, (1, dims[i + 1]), jnp.float32, -scale, scale)
        params.append((w, b))
    return params


def reference_forward(s, params, action_dim):
    """Pure-JAX f32 reference of the PyTorch forward (mu only)."""
    x = s
    n = len(params)
    for i, (w, b) in enumerate(params):
        x = x @ w + b
        if i < n - 1:
            x = jnp.maximum(x, 0.0)
        else:
            x = jnp.tanh(x)
    return x[:, :action_dim]


if __name__ == "__main__":
    # Small shapes consistent with the module: args.state_dim=16,
    # args.hidden_width=32, args.depth=2, args.action_dim=4, use_tanh=False.
    batch = 8
    state_dim = 16
    hidden_width = 32
    depth = 2
    action_dim = 4

    key = jax.random.PRNGKey(0)
    key, ks = jax.random.split(key)
    s = jax.random.normal(ks, (batch, state_dim), jnp.float32)

    params = init_params(key, state_dim, hidden_width, depth, action_dim)

    # One-time prep (hoisted out of the step); reuse `prepared` across calls.
    prepared = prepare_params(params, action_dim)

    mu = gauss_policy_mlp_forward(s, prepared, action_dim)
    mu = jax.block_until_ready(mu)

    mu_ref = reference_forward(s, params, action_dim)
    assert mu.shape == (batch, action_dim)
    # Tolerance loosened because weights/matmul operands are bf16 (f32 accum).
    assert jnp.allclose(mu, mu_ref, atol=3e-2, rtol=3e-2), "mismatch vs reference"

    # TODO(synk): get_dist() (soft_clamp of log_std + torch.distributions.Normal)
    # has no Pallas equivalent as a distribution object; only forward() (mu) is
    # kernelized.
    print("KERNEL_OK")
</pallas_src>

<mosaic_0001>
module attributes {stable_mosaic.version = 11 : i64} {
  func.func @_mlp_kernel(%arg0: i32, %arg1: memref<8x16xf32, #tpu.memory_space<vmem>>, %arg2: memref<16x32xbf16, #tpu.memory_space<vmem>>, %arg3: memref<1x32xf32, #tpu.memory_space<vmem>>, %arg4: memref<32x32xbf16, #tpu.memory_space<vmem>>, %arg5: memref<1x32xf32, #tpu.memory_space<vmem>>, %arg6: memref<32x4xbf16, #tpu.memory_space<vmem>>, %arg7: memref<1x4xf32, #tpu.memory_space<vmem>>, %arg8: memref<8x4xf32, #tpu.memory_space<vmem>>) attributes {dimension_semantics = [#tpu.dimension_semantics<parallel>], iteration_bounds = array<i64: 1>, scalar_prefetch = 0 : i64, scratch_operands = 0 : i64, tpu.core_type = #tpu.core_type<tc>, window_params = [{transform_indices = @transform_0, window_bounds = array<i64: 8, 16>}, {pipeline_mode = #tpu.pipeline_mode<synchronous>, transform_indices = @transform_1, window_bounds = array<i64: 16, 32>}, {pipeline_mode = #tpu.pipeline_mode<synchronous>, transform_indices = @transform_2, window_bounds = array<i64: 1, 32>}, {pipeline_mode = #tpu.pipeline_mode<synchronous>, transform_indices = @transform_3, window_bounds = array<i64: 32, 32>}, {pipeline_mode = #tpu.pipeline_mode<synchronous>, transform_indices = @transform_4, window_bounds = array<i64: 1, 32>}, {pipeline_mode = #tpu.pipeline_mode<synchronous>, transform_indices = @transform_5, window_bounds = array<i64: 32, 4>}, {pipeline_mode = #tpu.pipeline_mode<synchronous>, transform_indices = @transform_6, window_bounds = array<i64: 1, 4>}, {transform_indices = @transform_7, window_bounds = array<i64: 8, 4>}]} {
    %c0 = arith.constant 0 : index
    %c0_0 = arith.constant 0 : index
    %0 = vector.load %arg1[%c0, %c0_0] : memref<8x16xf32, #tpu.memory_space<vmem>>, vector<8x16xf32>
    %1 = arith.truncf %0 : vector<8x16xf32> to vector<8x16xbf16>
    %c0_1 = arith.constant 0 : index
    %c0_2 = arith.constant 0 : index
    %2 = vector.load %arg2[%c0_1, %c0_2] : memref<16x32xbf16, #tpu.memory_space<vmem>>, vector<16x32xbf16>
    %c0_3 = arith.constant 0 : index
    %c0_4 = arith.constant 0 : index
    %3 = vector.load %arg3[%c0_3, %c0_4] : memref<1x32xf32, #tpu.memory_space<vmem>>, vector<1x32xf32>
    %cst = arith.constant dense<0.000000e+00> : vector<8x32xf32>
    %4 = tpu.matmul %1, %2, %cst {dimension_numbers = #tpu.dot_dimension_numbers<[1], [0], [0], [1], [0, 0, 1, 1], [], []>} : vector<8x16xbf16>, vector<16x32xbf16>, vector<8x32xf32> -> vector<8x32xf32>
    %5 = vector.broadcast %3 : vector<1x32xf32> to vector<8x32xf32>
    %6 = arith.addf %4, %5 : vector<8x32xf32>
    %cst_5 = arith.constant 0.000000e+00 : f32
    %7 = vector.broadcast %cst_5 : f32 to vector<8x32xf32>
    %8 = arith.maximumf %6, %7 : vector<8x32xf32>
    %9 = arith.truncf %8 : vector<8x32xf32> to vector<8x32xbf16>
    %c0_6 = arith.constant 0 : index
    %c0_7 = arith.constant 0 : index
    %10 = vector.load %arg4[%c0_6, %c0_7] : memref<32x32xbf16, #tpu.memory_space<vmem>>, vector<32x32xbf16>
    %c0_8 = arith.constant 0 : index
    %c0_9 = arith.constant 0 : index
    %11 = vector.load %arg5[%c0_8, %c0_9] : memref<1x32xf32, #tpu.memory_space<vmem>>, vector<1x32xf32>
    %cst_10 = arith.constant dense<0.000000e+00> : vector<8x32xf32>
    %12 = tpu.matmul %9, %10, %cst_10 {dimension_numbers = #tpu.dot_dimension_numbers<[1], [0], [0], [1], [0, 0, 1, 1], [], []>} : vector<8x32xbf16>, vector<32x32xbf16>, vector<8x32xf32> -> vector<8x32xf32>
    %13 = vector.broadcast %11 : vector<1x32xf32> to vector<8x32xf32>
    %14 = arith.addf %12, %13 : vector<8x32xf32>
    %cst_11 = arith.constant 0.000000e+00 : f32
    %15 = vector.broadcast %cst_11 : f32 to vector<8x32xf32>
    %16 = arith.maximumf %14, %15 : vector<8x32xf32>
    %17 = arith.truncf %16 : vector<8x32xf32> to vector<8x32xbf16>
    %c0_12 = arith.constant 0 : index
    %c0_13 = arith.constant 0 : index
    %18 = vector.load %arg6[%c0_12, %c0_13] : memref<32x4xbf16, #tpu.memory_space<vmem>>, vector<32x4xbf16>
    %c0_14 = arith.constant 0 : index
    %c0_15 = arith.constant 0 : index
    %19 = vector.load %arg7[%c0_14, %c0_15] : memref<1x4xf32, #tpu.memory_space<vmem>>, vector<1x4xf32>
    %cst_16 = arith.constant dense<0.000000e+00> : vector<8x4xf32>
    %20 = tpu.matmul %17, %18, %cst_16 {dimension_numbers = #tpu.dot_dimension_numbers<[1], [0], [0], [1], [0, 0, 1, 1], [], []>} : vector<8x32xbf16>, vector<32x4xbf16>, vector<8x4xf32> -> vector<8x4xf32>
    %21 = vector.broadcast %19 : vector<1x4xf32> to vector<8x4xf32>
    %22 = arith.addf %20, %21 : vector<8x4xf32>
    %23 = math.tanh %22 : vector<8x4xf32>
    %c0_17 = arith.constant 0 : index
    %c0_18 = arith.constant 0 : index
    %24 = vector.load %arg8[%c0_17, %c0_18] : memref<8x4xf32, #tpu.memory_space<vmem>>, vector<8x4xf32>
    tpu.vector_store %arg8[%c0_17, %c0_18], %23 {strides = array<i32>} : memref<8x4xf32, #tpu.memory_space<vmem>>, vector<8x4xf32>,
    return
  }
  func.func @transform_0(%arg0: i32) -> (i32, i32) {
    %c0_i32 = arith.constant 0 : i32
    %c0_i32_0 = arith.constant 0 : i32
    return %arg0, %c0_i32 : i32, i32
  }
  func.func @transform_1(%arg0: i32) -> (i32, i32) {
    %c0_i32 = arith.constant 0 : i32
    %c0_i32_0 = arith.constant 0 : i32
    %c0_i32_1 = arith.constant 0 : i32
    return %c0_i32, %c0_i32_0 : i32, i32
  }
  func.func @transform_2(%arg0: i32) -> (i32, i32) {
    %c0_i32 = arith.constant 0 : i32
    %c0_i32_0 = arith.constant 0 : i32
    %c0_i32_1 = arith.constant 0 : i32
    return %c0_i32, %c0_i32_0 : i32, i32
  }
  func.func @transform_3(%arg0: i32) -> (i32, i32) {
    %c0_i32 = arith.constant 0 : i32
    %c0_i32_0 = arith.constant 0 : i32
    %c0_i32_1 = arith.constant 0 : i32
    return %c0_i32, %c0_i32_0 : i32, i32
  }
  func.func @transform_4(%arg0: i32) -> (i32, i32) {
    %c0_i32 = arith.constant 0 : i32
    %c0_i32_0 = arith.constant 0 : i32
    %c0_i32_1 = arith.constant 0 : i32
    return %c0_i32, %c0_i32_0 : i32, i32
  }
  func.func @transform_5(%arg0: i32) -> (i32, i32) {
    %c0_i32 = arith.constant 0 : i32
    %c0_i32_0 = arith.constant 0 : i32
    %c0_i32_1 = arith.constant 0 : i32
    return %c0_i32, %c0_i32_0 : i32, i32
  }
  func.func @transform_6(%arg0: i32) -> (i32, i32) {
    %c0_i32 = arith.constant 0 : i32
    %c0_i32_0 = arith.constant 0 : i32
    %c0_i32_1 = arith.constant 0 : i32
    return %c0_i32, %c0_i32_0 : i32, i32
  }
  func.func @transform_7(%arg0: i32) -> (i32, i32) {
    %c0_i32 = arith.constant 0 : i32
    %c0_i32_0 = arith.constant 0 : i32
    return %arg0, %c0_i32 : i32, i32
  }
}

</mosaic_0001>

<bundles_post_ra>
// kernel: tpu_custom_call.1
= control target key start
LH: loop header
LB: loop body
LE: loop exit
PB: predicated region body
PF: predicated region fallthrough
CT: control target
= control target key end

     0   :  { %12 = vsyncpa [#allocation3], 0  ;;  %s324_s24 = smov [#allocation2]   ;;  %s408_s0 = inlined_call_operand.vmem [shape: f32[8,16], index: 0, kind: input, shape index: {}]   ;;  %s409_s1 = inlined_call_operand.hbm [shape: bf16[16,32], index: 1, kind: input, shape index: {}]   ;;  %s410_s2 = inlined_call_operand.vmem [shape: f32[1,32], index: 2, kind: input, shape index: {}]   ;;  %s411_s3 = inlined_call_operand.vmem [shape: bf16[32,32], index: 3, kind: input, shape index: {}]   ;;  %s412_s4 = inlined_call_operand.vmem [shape: f32[1,32], index: 4, kind: input, shape index: {}]   ;;  %s413_s5 = inlined_call_operand.vmem [shape: bf16[32,4], index: 5, kind: input, shape index: {}]   ;;  %s414_s6 = inlined_call_operand.vmem [shape: f32[1,4], index: 6, kind: input, shape index: {}]   ;;  %s415_s7 = inlined_call_operand.vmem [shape: f32[8,4], index: 7, kind: output, shape index: {}]  }
   0x1   :  { %s20_s25 = sshll.u32 %s324_s24, 4  ;;  %s300_s28 = scalar_lea.hbm %s409_s1, 128  ;;  %s21_s25 = int_to_ptr.vmem [resolvable:$true] %s20_s25 }
   0x2   :  { %p301_p0 = scmp.ne.s32.totalorder %s409_s1, %s300_s28  ;;  %p304_p1 = scmp.lt.u32.totalorder %s300_s28, %s409_s1 }
   0x4   :  { %p306_p2 = pnand %p304_p1, %p301_p0 }
   0x6   :  { %309 = shalt.err (!%p306_p2)
}
   0x7   :  { %s310_s10 = scalar_lea.vmem %s21_s25, 128  ;;  %p315_p4 = scmp.lt.s32.totalorder %s21_s25, %s21_s25 }
   0x8   :  { %p311_p3 = scmp.ne.s32.totalorder %s21_s25, %s310_s10  ;;  %p316_p5 = scmp.lt.s32.totalorder %s310_s10, %s310_s10 }
   0xa   :  { %p317_p6 = por %p316_p5, %p315_p4 }
   0xc   :  { %p318_p7 = pnand %p317_p6, %p311_p3 }
   0xe   :  { %321 = shalt.err (!%p318_p7)
}
   0xf   :  { %s325_s11 = smov 64   ;;  %s326_s12 = smov 4  }
  0x10   :  { %26 = dma.hbm_to_vmem [thread:$0]  %s409_s1, 128, %s21_s25, [#allocation3], %s325_s11, %s325_s11, %s326_s12  }
  0x11   :  { %322 = dma.done.wait [#allocation3], 128  }
  0x12   :  { %323 = vsyncadd [#allocation3], 4294967168  ;;  %v327_v0 = vmov 0.0   ;;  %vm328_vm0 = vmmov 0   ;;  %v293_v1 = vld [vmem:[#allocation2] sm:$0xff]   ;;  %vm58_vm1 = vcmask 130048  }
  0x13   :  { %266 = vmatprep.subr.bf16.mxu0 %v327_v0  ;;  %268 = vmatprep.mubr.msk.bf16.mxu0 %vm328_vm0, %v327_v0  ;;  %v41_v2 = vld [vmem:[%s408_s0] sm:$0xff]  ;;  %v295_v5 = vld [vmem:[%s411_s3 + $0x8] sm:$0xff]   ;;  %vm127_vm2 = vcmask 261120   ;;  %vm240_vm3 = vcmask 31744  }
  0x14   :  { %272 = vmatprep.subr.bf16.mxu1 %v327_v0  ;;  %276 = vmatprep.mubr.msk.bf16.mxu1 %vm328_vm0, %v327_v0  ;;  %v42_v3 = vpack.c.bf16 %v41_v2, %v41_v2  ;;  %v294_v4 = vld [vmem:[%s411_s3] sm:$0xff]   ;;  %v297_v15 = vld [vmem:[%s413_s5 + $0x8] sm:$0xff]  }
  0x15   :  { %267 = vmatpush3.bf16.msra.mxu0 %v293_v1  ;;  %273 = vmatpush3.bf16.msra.mxu1 %v294_v4  ;;  %v296_v6 = vld [vmem:[%s413_s5] sm:$0xff]  }
  0x16   :  { %280 = vmatprep.subr.bf16.mxu0 %v327_v0  ;;  %274 = vmatprep.subr.bf16.mxu1 %v327_v0  ;;  %v247_v7 = vld [vmem:[%s410_s2] ss:$0 sm:$0xff] }
  0x17   :  { %v250_v16 = vld [vmem:[%s412_s4] ss:$0 sm:$0xff] }
  0x18   :  { %269 = vmatmul.mubr.msk.bf16.vlgmr.msra.gmra.mrb[0].mxu0 %vm58_vm1, %v42_v3  ;;  %v254_v24 = vld [vmem:[%s414_s6] ss:$0 sm:$0xff] }
  0x19   :  { %284 = vmatprep.mubr.msk.bf16.mxu0 %vm328_vm0, %v327_v0  ;;  %275 = vmatpush3.bf16.msra.mxu1 %v295_v5 }
  0x1a   :  { %281 = vmatpush3.bf16.msra.mxu0 %v296_v6 }
  0x1b   :  { %282 = vmatprep.subr.bf16.mxu0 %v327_v0 }
  0x1e   :  { %283 = vmatpush3.bf16.msra.mxu0 %v297_v15 }
  0xeb   :  { %v96_v8 = vpop.f32.mrb[0].mxu0 }
  0xec   :  { %v97_v9 = vadd.f32 %v247_v7, %v96_v8  ;;  %v270_v10 = vpop.f32.mrb[1].mxu0 }
  0xed   :  { %v99_v11 = vpop.f32.mrb[2].mxu0 }
  0xee   :  { %v102_v12 = vmax.f32 %v97_v9, 0.0  ;;  %v271_v13 = vpop.f32.mrb[3].mxu0 }
  0xf0   :  { %v103_v14 = vpack.c.bf16 %v102_v12, %v102_v12 }
  0xf2   :  { %277 = vmatmul.mubr.msk.bf16.vlgmr.msra.gmra.mrb[0].mxu1 %vm127_vm2, %v103_v14 }
 0x1c5   :  { %v165_v17 = vpop.f32.mrb[0].mxu1 }
 0x1c6   :  { %v166_v18 = vadd.f32 %v250_v16, %v165_v17  ;;  %v278_v19 = vpop.f32.mrb[1].mxu1 }
 0x1c7   :  { %v168_v20 = vpop.f32.mrb[2].mxu1 }
 0x1c8   :  { %v171_v21 = vmax.f32 %v166_v18, 0.0  ;;  %v279_v22 = vpop.f32.mrb[3].mxu1 }
 0x1ca   :  { %v172_v23 = vpack.c.bf16 %v171_v21, %v171_v21 }
 0x1cc   :  { %285 = vmatmul.mubr.msk.bf16.vlgmr.msra.gmra.mrb[4].mxu0 %vm127_vm2, %v172_v23 }
 0x29f   :  { %v233_v25 = vpop.f32.mrb[4].mxu0 }
 0x2a0   :  { %v234_v26 = vadd.f32 %v254_v24, %v233_v25  ;;  %v286_v27 = vpop.f32.mrb[5].mxu0 }
 0x2a1   :  { %v236_v28 = vpop.f32.mrb[6].mxu0 }
 0x2a2   :  { %298 = vtanh.f32 %v234_v26  ;;  %v287_v29 = vpop.f32.mrb[7].mxu0 }
 0x2ac   :  { %v299_v30 = vpop.eup %298 }
 0x2ad   :  { %241 = vst.msk [vmem:[%s415_s7] sm:$0xff] %vm240_vm3, %v299_v30 }
 0x2ae   :  { %246 = vsyncpa [#allocation3], 1 }

</bundles_post_ra>
